<compile_context>
chip_gen: v5e
topology: v5e:2x2
jax: 0.10.0
libtpu: 0.0.40
codegen_flags: <defaults>
</compile_context>

<pallas_src>
import math

import jax
import jax.numpy as jnp
from jax.experimental import pallas as pl
from jax.experimental.pallas import tpu as pltpu

_INV_SQRT2 = 1.0 / math.sqrt(2.0)


def _mlp_kernel(x_ref, w1_ref, b1_ref, w2_ref, b2_ref, o_ref, acc_ref):
    k = pl.program_id(1)

    @pl.when(k == 0)
    def _():
        acc_ref[...] = jnp.zeros_like(acc_ref)

    # fc1 H-slab: (tm, c_in) @ (c_in, th) -> f32 on the MXU
    h = jnp.dot(x_ref[...], w1_ref[...], preferred_element_type=jnp.float32)
    h = h + b1_ref[...]                                   # b1 kept in f32
    # exact erf GELU in f32 (matches torch.nn.GELU() default)
    h = 0.5 * h * (1.0 + jax.lax.erf(h * _INV_SQRT2))
    # fc2 H-slab: accumulate (tm, th) @ (th, c_out) into the f32 accumulator
    acc_ref[...] += jnp.dot(h.astype(w2_ref.dtype), w2_ref[...],
                            preferred_element_type=jnp.float32)

    @pl.when(k == pl.num_programs(1) - 1)
    def _():
        # add fc2 bias exactly once, cast, store (lane-dense (tm, c_out) slab)
        o_ref[...] = (acc_ref[...] + b2_ref[...]).astype(o_ref.dtype)
    # TODO(synk): Dropout with p>0 would need pltpu.prng_seed/prng_random_bits;
    # the module constructs nn.Dropout(0.0) so it is an exact no-op here.


def _round_up(x, m):
    return ((x + m - 1) // m) * m


def _pick_th(hidden, th):
    """Hidden-axis tile: multiple of 128 dividing H, else the full H."""
    if th is None:
        for cand in (512, 256, 128):
            if hidden % cand == 0:
                return cand
        return hidden
    if th >= hidden:
        return hidden
    if hidden % th == 0 and th % 128 == 0:
        return th
    return hidden


def mlp_pallas(x, w1, b1, w2, b2, *, tm=256, th=None,
               compute_dtype=jnp.bfloat16):
    """ViTDet Mlp forward.

    x : (..., c_in).  Weights pre-transposed vs torch.nn.Linear:
    w1: (c_in, hidden), b1: (hidden,), w2: (hidden, c_out), b2: (c_out,).
    """
    orig_shape = x.shape
    out_dtype = x.dtype
    c_in = orig_shape[-1]
    hidden = w1.shape[1]
    c_out = w2.shape[1]

    x2d = x.reshape(-1, c_in)
    m = x2d.shape[0]

    # M tile: multiple of 8 sublanes, no larger than the (padded) token count.
    tm = max(8, min(tm, _round_up(m, 8)))
    tm = _round_up(tm, 8)
    m_pad = _round_up(m, tm)
    if m_pad != m:
        x2d = jnp.pad(x2d, ((0, m_pad - m), (0, 0)))

    th = _pick_th(hidden, th)
    n_k = hidden // th

    # Compute-dtype MXU inputs (bf16 by default); f32 biases + accumulation.
    x2d = x2d.astype(compute_dtype)
    w1c = w1.astype(compute_dtype)
    w2c = w2.astype(compute_dtype)
    b1_2d = b1.reshape(1, hidden).astype(jnp.float32)
    b2_2d = b2.reshape(1, c_out).astype(jnp.float32)

    # VMEM budget: double-buffered tiles + f32 accumulator, with margin.
    cbytes = jnp.dtype(compute_dtype).itemsize
    est = (2 * (tm * c_in + c_in * th + th * c_out + tm * c_out) * cbytes
           + 2 * (th + c_out) * 4 + tm * c_out * 4)
    vmem_limit = int(min(max(2 * est, 32 << 20), 64 << 20))

    out2d = pl.pallas_call(
        _mlp_kernel,
        out_shape=jax.ShapeDtypeStruct((m_pad, c_out), out_dtype),
        grid_spec=pltpu.PrefetchScalarGridSpec(
            num_scalar_prefetch=0,
            grid=(m_pad // tm, n_k),                        # reduction axis last
            in_specs=[
                pl.BlockSpec((tm, c_in), lambda i, k: (i, 0)),    # x tile
                pl.BlockSpec((c_in, th), lambda i, k: (0, k)),    # W1 H-slab
                pl.BlockSpec((1, th), lambda i, k: (0, k)),       # b1 H-slab
                pl.BlockSpec((th, c_out), lambda i, k: (k, 0)),   # W2 H-slab
                pl.BlockSpec((1, c_out), lambda i, k: (0, 0)),    # b2
            ],
            out_specs=pl.BlockSpec((tm, c_out), lambda i, k: (i, 0)),
            scratch_shapes=[pltpu.VMEM((tm, c_out), jnp.float32)],
        ),
        compiler_params=pltpu.CompilerParams(
            dimension_semantics=("parallel", "arbitrary"),
            vmem_limit_bytes=vmem_limit),
    )(x2d, w1c, b1_2d, w2c, b2_2d)

    if m_pad != m:
        out2d = out2d[:m]
    return out2d.reshape(*orig_shape[:-1], c_out)


def init_mlp_params(key, in_features, hidden_features, out_features,
                    dtype=jnp.float32):
    """Deterministic init matching torch.nn.Linear shapes (stored transposed)."""
    k1, k2, k3, k4 = jax.random.split(key, 4)
    bound1 = 1.0 / math.sqrt(in_features)
    bound2 = 1.0 / math.sqrt(hidden_features)
    w1 = jax.random.uniform(k1, (in_features, hidden_features),
                            minval=-bound1, maxval=bound1, dtype=dtype)
    b1 = jax.random.uniform(k2, (hidden_features,),
                            minval=-bound1, maxval=bound1, dtype=dtype)
    w2 = jax.random.uniform(k3, (hidden_features, out_features),
                            minval=-bound2, maxval=bound2, dtype=dtype)
    b2 = jax.random.uniform(k4, (out_features,),
                            minval=-bound2, maxval=bound2, dtype=dtype)
    return w1, b1, w2, b2


def mlp_ref(x, w1, b1, w2, b2):
    """Plain-JAX reference (f32, exact erf GELU, drop=0.0)."""
    h = (x.reshape(-1, x.shape[-1]).astype(jnp.float32)
         @ w1.astype(jnp.float32) + b1.astype(jnp.float32))
    h = 0.5 * h * (1.0 + jax.lax.erf(h * _INV_SQRT2))
    y = h @ w2.astype(jnp.float32) + b2.astype(jnp.float32)
    return y.reshape(*x.shape[:-1], w2.shape[1]).astype(x.dtype)


if __name__ == "__main__":
    key = jax.random.PRNGKey(0)

    # ---- Test 1: tiny module shapes, f32 compute path (tight check) ----
    B, N, C_IN, HIDDEN = 2, 8, 16, 32
    C_OUT = C_IN  # out_features defaults to in_features
    kx, kp = jax.random.split(key)
    x = jax.random.normal(kx, (B, N, C_IN), dtype=jnp.float32)
    w1, b1, w2, b2 = init_mlp_params(kp, C_IN, HIDDEN, C_OUT)

    y = jax.block_until_ready(
        mlp_pallas(x, w1, b1, w2, b2, compute_dtype=jnp.float32))
    y_ref = mlp_ref(x, w1, b1, w2, b2)
    assert jnp.allclose(y, y_ref, atol=1e-5, rtol=1e-5), "f32 mismatch vs ref"

    # ---- Test 2: exercises hidden-axis tiling (2 k-steps) + bf16 MXU path ----
    B2, N2, C2, H2 = 2, 64, 128, 256
    kx2, kp2 = jax.random.split(kp)
    x2 = jax.random.normal(kx2, (B2, N2, C2), dtype=jnp.float32)
    p2 = init_mlp_params(kp2, C2, H2, C2)
    y2 = jax.block_until_ready(
        mlp_pallas(x2, *p2, th=128, compute_dtype=jnp.bfloat16))
    y2_ref = mlp_ref(x2, *p2)
    rel_err = jnp.max(jnp.abs(y2 - y2_ref)) / (jnp.max(jnp.abs(y2_ref)) + 1e-6)
    assert rel_err < 8e-2, f"bf16 mismatch vs ref (rel_err={rel_err})"

    print("KERNEL_OK")
</pallas_src>

<mosaic_0001>
module attributes {stable_mosaic.version = 11 : i64} {
  func.func @_mlp_kernel(%arg0: i32, %arg1: i32, %arg2: memref<16x16xf32, #tpu.memory_space<vmem>>, %arg3: memref<16x32xf32, #tpu.memory_space<vmem>>, %arg4: memref<1x32xf32, #tpu.memory_space<vmem>>, %arg5: memref<32x16xf32, #tpu.memory_space<vmem>>, %arg6: memref<1x16xf32, #tpu.memory_space<vmem>>, %arg7: memref<16x16xf32, #tpu.memory_space<vmem>>, %arg8: memref<16x16xf32, #tpu.memory_space<vmem>>) attributes {dimension_semantics = [#tpu.dimension_semantics<parallel>, #tpu.dimension_semantics<arbitrary>], iteration_bounds = array<i64: 1, 1>, scalar_prefetch = 0 : i64, scratch_operands = 1 : i64, tpu.core_type = #tpu.core_type<tc>, window_params = [{transform_indices = @transform_0, window_bounds = array<i64: 16, 16>}, {transform_indices = @transform_1, window_bounds = array<i64: 16, 32>}, {transform_indices = @transform_2, window_bounds = array<i64: 1, 32>}, {transform_indices = @transform_3, window_bounds = array<i64: 32, 16>}, {pipeline_mode = #tpu.pipeline_mode<synchronous>, transform_indices = @transform_4, window_bounds = array<i64: 1, 16>}, {transform_indices = @transform_5, window_bounds = array<i64: 16, 16>}]} {
    %c0_i32 = arith.constant 0 : i32
    %0 = arith.cmpi eq, %arg1, %c0_i32 : i32
    %1 = arith.extui %0 : i1 to i32
    %c0_i32_0 = arith.constant 0 : i32
    %2 = arith.cmpi ne, %1, %c0_i32_0 : i32
    scf.if %2 {
      %cst_18 = arith.constant 0.000000e+00 : f32
      %25 = vector.broadcast %cst_18 : f32 to vector<16x16xf32>
      %c0_19 = arith.constant 0 : index
      %c0_20 = arith.constant 0 : index
      %26 = vector.load %arg8[%c0_19, %c0_20] : memref<16x16xf32, #tpu.memory_space<vmem>>, vector<16x16xf32>
      tpu.vector_store %arg8[%c0_19, %c0_20], %25 {strides = array<i32>} : memref<16x16xf32, #tpu.memory_space<vmem>>, vector<16x16xf32>,
    } else {
    }
    %c0 = arith.constant 0 : index
    %c0_1 = arith.constant 0 : index
    %3 = vector.load %arg2[%c0, %c0_1] : memref<16x16xf32, #tpu.memory_space<vmem>>, vector<16x16xf32>
    %c0_2 = arith.constant 0 : index
    %c0_3 = arith.constant 0 : index
    %4 = vector.load %arg3[%c0_2, %c0_3] : memref<16x32xf32, #tpu.memory_space<vmem>>, vector<16x32xf32>
    %cst = arith.constant dense<0.000000e+00> : vector<16x32xf32>
    %5 = tpu.matmul %3, %4, %cst {dimension_numbers = #tpu.dot_dimension_numbers<[1], [0], [0], [1], [0, 0, 1, 1], [], []>} : vector<16x16xf32>, vector<16x32xf32>, vector<16x32xf32> -> vector<16x32xf32>
    %c0_4 = arith.constant 0 : index
    %c0_5 = arith.constant 0 : index
    %6 = vector.load %arg4[%c0_4, %c0_5] : memref<1x32xf32, #tpu.memory_space<vmem>>, vector<1x32xf32>
    %7 = vector.broadcast %6 : vector<1x32xf32> to vector<16x32xf32>
    %8 = arith.addf %5, %7 : vector<16x32xf32>
    %cst_6 = arith.constant 5.000000e-01 : f32
    %9 = vector.broadcast %cst_6 : f32 to vector<16x32xf32>
    %10 = arith.mulf %9, %8 : vector<16x32xf32>
    %cst_7 = arith.constant 0.707106769 : f32
    %11 = vector.broadcast %cst_7 : f32 to vector<16x32xf32>
    %12 = arith.mulf %8, %11 : vector<16x32xf32>
    %13 = math.erf %12 : vector<16x32xf32>
    %cst_8 = arith.constant 1.000000e+00 : f32
    %14 = vector.broadcast %cst_8 : f32 to vector<16x32xf32>
    %15 = arith.addf %14, %13 : vector<16x32xf32>
    %16 = arith.mulf %10, %15 : vector<16x32xf32>
    %c0_9 = arith.constant 0 : index
    %c0_10 = arith.constant 0 : index
    %17 = vector.load %arg8[%c0_9, %c0_10] : memref<16x16xf32, #tpu.memory_space<vmem>>, vector<16x16xf32>
    %c0_11 = arith.constant 0 : index
    %c0_12 = arith.constant 0 : index
    %18 = vector.load %arg5[%c0_11, %c0_12] : memref<32x16xf32, #tpu.memory_space<vmem>>, vector<32x16xf32>
    %cst_13 = arith.constant dense<0.000000e+00> : vector<16x16xf32>
    %19 = tpu.matmul %16, %18, %cst_13 {dimension_numbers = #tpu.dot_dimension_numbers<[1], [0], [0], [1], [0, 0, 1, 1], [], []>} : vector<16x32xf32>, vector<32x16xf32>, vector<16x16xf32> -> vector<16x16xf32>
    %20 = arith.addf %17, %19 : vector<16x16xf32>
    %c0_14 = arith.constant 0 : index
    %c0_15 = arith.constant 0 : index
    %21 = vector.load %arg8[%c0_14, %c0_15] : memref<16x16xf32, #tpu.memory_space<vmem>>, vector<16x16xf32>
    tpu.vector_store %arg8[%c0_14, %c0_15], %20 {strides = array<i32>} : memref<16x16xf32, #tpu.memory_space<vmem>>, vector<16x16xf32>,
    %c0_i32_16 = arith.constant 0 : i32
    %22 = arith.cmpi eq, %arg1, %c0_i32_16 : i32
    %23 = arith.extui %22 : i1 to i32
    %c0_i32_17 = arith.constant 0 : i32
    %24 = arith.cmpi ne, %23, %c0_i32_17 : i32
    scf.if %24 {
      %c0_18 = arith.constant 0 : index
      %c0_19 = arith.constant 0 : index
      %25 = vector.load %arg8[%c0_18, %c0_19] : memref<16x16xf32, #tpu.memory_space<vmem>>, vector<16x16xf32>
      %c0_20 = arith.constant 0 : index
      %c0_21 = arith.constant 0 : index
      %26 = vector.load %arg6[%c0_20, %c0_21] : memref<1x16xf32, #tpu.memory_space<vmem>>, vector<1x16xf32>
      %27 = vector.broadcast %26 : vector<1x16xf32> to vector<16x16xf32>
      %28 = arith.addf %25, %27 : vector<16x16xf32>
      %c0_22 = arith.constant 0 : index
      %c0_23 = arith.constant 0 : index
      %29 = vector.load %arg7[%c0_22, %c0_23] : memref<16x16xf32, #tpu.memory_space<vmem>>, vector<16x16xf32>
      tpu.vector_store %arg7[%c0_22, %c0_23], %28 {strides = array<i32>} : memref<16x16xf32, #tpu.memory_space<vmem>>, vector<16x16xf32>,
    } else {
    }
    return
  }
  func.func @transform_0(%arg0: i32, %arg1: i32) -> (i32, i32) {
    %c0_i32 = arith.constant 0 : i32
    %c0_i32_0 = arith.constant 0 : i32
    return %arg0, %c0_i32 : i32, i32
  }
  func.func @transform_1(%arg0: i32, %arg1: i32) -> (i32, i32) {
    %c0_i32 = arith.constant 0 : i32
    %c0_i32_0 = arith.constant 0 : i32
    return %c0_i32, %arg1 : i32, i32
  }
  func.func @transform_2(%arg0: i32, %arg1: i32) -> (i32, i32) {
    %c0_i32 = arith.constant 0 : i32
    %c0_i32_0 = arith.constant 0 : i32
    return %c0_i32, %arg1 : i32, i32
  }
  func.func @transform_3(%arg0: i32, %arg1: i32) -> (i32, i32) {
    %c0_i32 = arith.constant 0 : i32
    %c0_i32_0 = arith.constant 0 : i32
    return %arg1, %c0_i32 : i32, i32
  }
  func.func @transform_4(%arg0: i32, %arg1: i32) -> (i32, i32) {
    %c0_i32 = arith.constant 0 : i32
    %c0_i32_0 = arith.constant 0 : i32
    %c0_i32_1 = arith.constant 0 : i32
    return %c0_i32, %c0_i32_0 : i32, i32
  }
  func.func @transform_5(%arg0: i32, %arg1: i32) -> (i32, i32) {
    %c0_i32 = arith.constant 0 : i32
    %c0_i32_0 = arith.constant 0 : i32
    return %arg0, %c0_i32 : i32, i32
  }
}

</mosaic_0001>

<bundles_post_ra>
// kernel: tpu_custom_call.1
= control target key start
LH: loop header
LB: loop body
LE: loop exit
PB: predicated region body
PF: predicated region fallthrough
CT: control target
= control target key end

     0   :  { %vm25_vm0 = vcmask 130048   ;;  %s366_s0 = inlined_call_operand.vmem [shape: f32[16,16], index: 0, kind: input, shape index: {}]   ;;  %s367_s1 = inlined_call_operand.vmem [shape: f32[16,32], index: 1, kind: input, shape index: {}]   ;;  %s368_s2 = inlined_call_operand.vmem [shape: f32[1,32], index: 2, kind: input, shape index: {}]   ;;  %s369_s3 = inlined_call_operand.vmem [shape: f32[32,16], index: 3, kind: input, shape index: {}]   ;;  %s370_s4 = inlined_call_operand.vmem [shape: f32[1,16], index: 4, kind: input, shape index: {}]   ;;  %s371_s5 = inlined_call_operand.hbm [shape: f32[16,16], index: 5, kind: output, shape index: {}]  }
   0x1   :  { %v31_v0 = vld [vmem:[%s367_s1 + $0x8] sm:$0xff]  ;;  %v30_v1 = vld [vmem:[%s367_s1] sm:$0xff] }
   0x2   :  { %57 = vmatpush.msra.mxu0 %v31_v0  ;;  %231 = vmatpush.msra.mxu3 %v31_v0  ;;  %v28_v2 = vld [vmem:[%s366_s0] sm:$0xff]  ;;  %v29_v3 = vld [vmem:[%s366_s0 + $0x8] sm:$0xff] }
   0x3   :  { %10 = vsyncpa [#allocation4], 0  ;;  %v241_v4 = vld [vmem:[%s368_s2] ss:$0 sm:$0xff]  ;;  %v159_v25 = vld [vmem:[%s369_s3 + $0x18] sm:$0xff]  ;;  %v273_v50 = vmov 0.0  }
   0x4   :  { %58 = vmatpush.msra.mxu0 %v30_v1  ;;  %232 = vmatpush.msra.mxu3 %v30_v1  ;;  %v158_v29 = vld [vmem:[%s369_s3 + $0x10] sm:$0xff]  ;;  %v157_v34 = vld [vmem:[%s369_s3 + $0x8] sm:$0xff]  ;;  %v156_v36 = vld [vmem:[%s369_s3] sm:$0xff]  ;;  %26 = vst.msk [vmem:[#allocation2] sm:$0xff] %vm25_vm0, %v273_v50  ;;  %vm160_vm9 = vcmask 261120   ;;  %s274_s9 = smov [#allocation3]  }
   0x5   :  { %225 = vmatmul.msk.f32.vlgmr.msra.gmra.mxu0 %vm25_vm0, %v28_v2  ;;  %226 = vmatmul.msk.f32.vlgmr.msra.gmra.mxu3 %vm25_vm0, %v29_v3  ;;  %27 = vst.msk [vmem:[#allocation2 + $0x8] sm:$0xff] %vm25_vm0, %v273_v50  ;;  %s211_s10 = sshll.u32 %s274_s9, 4  ;;  %s213_s13 = sshll.u32 %s371_s5, 4  ;;  %s212_s10 = int_to_ptr.vmem [resolvable:$true] %s211_s10  ;;  %s214_s13 = int_to_ptr.hbm [resolvable:$true] %s213_s13 }
   0x6   :  { %179 = vmatpush.msra.mxu1 %v159_v25  ;;  %233 = vmatpush.msra.mxu2 %v159_v25  ;;  %s276_s14 = smov 8  }
   0x8   :  { %180 = vmatpush.msra.mxu1 %v158_v29  ;;  %234 = vmatpush.msra.mxu2 %v158_v29 }
   0xa   :  { %181 = vmatpush.msra.mxu1 %v157_v34  ;;  %235 = vmatpush.msra.mxu2 %v157_v34 }
   0xc   :  { %182 = vmatpush.msra.mxu1 %v156_v36  ;;  %236 = vmatpush.msra.mxu2 %v156_v36  ;;  %v155_v34 = vld [vmem:[#allocation2 + $0x8] sm:$0xff] }
  0x82   :  { %v60_v5 = vpop.f32.mrf.mxu0 }
  0x83   :  { %v324_v6 = vadd.f32 %v241_v4, %v60_v5 }
  0x85   :  { %v327_v7 = vmul.f32 0.70710677, %v324_v6 }
  0x87   :  { %v70_v8 = vmul.f32 %v327_v7, %v327_v7 }
  0x88   :  { %v63_v9 = vpop.f32.mrf.mxu3 }
  0x89   :  { %v71_v10 = vmin.f32 %v70_v8, 16.0  ;;  %v331_v11 = vadd.f32 %v241_v4, %v63_v9 }
  0x8b   :  { %v72_v12 = vmul.f32 2.1237322e-06, %v71_v10  ;;  %v83_v13 = vmul.f32 3.8918573e-05, %v71_v10  ;;  %v334_v14 = vmul.f32 0.70710677, %v331_v11 }
  0x8d   :  { %v73_v15 = vadd.f32 0.00028619796, %v72_v12  ;;  %v84_v16 = vadd.f32 0.001143296, %v83_v13  ;;  %v110_v17 = vmul.f32 %v334_v14, %v334_v14 }
  0x8f   :  { %v74_v18 = vmul.f32 %v73_v15, %v71_v10  ;;  %v85_v19 = vmul.f32 %v84_v16, %v71_v10  ;;  %v111_v20 = vmin.f32 %v110_v17, 16.0 }
  0x91   :  { %v75_v21 = vadd.f32 0.0036580483, %v74_v18  ;;  %v86_v22 = vadd.f32 0.014752088, %v85_v19  ;;  %v112_v23 = vmul.f32 2.1237322e-06, %v111_v20 }
  0x92   :  { %v123_v24 = vmul.f32 3.8918573e-05, %v111_v20 }
  0x93   :  { %v87_v26 = vmul.f32 %v86_v22, %v71_v10  ;;  %v113_v27 = vadd.f32 0.00028619796, %v112_v23  ;;  %v76_v31 = vmul.f32 %v75_v21, %v71_v10  ;;  %v66_v21 = vmul.f32 0.5, %v324_v6 }
  0x94   :  { %v124_v28 = vadd.f32 0.001143296, %v123_v24 }
  0x95   :  { %v88_v30 = vadd.f32 0.112945676, %v87_v26  ;;  %v114_v32 = vmul.f32 %v113_v27, %v111_v20  ;;  %v77_v40 = vadd.f32 0.05243302, %v76_v31  ;;  %v154_v31 = vld [vmem:[#allocation2] sm:$0xff] }
  0x96   :  { %v125_v33 = vmul.f32 %v124_v28, %v111_v20  ;;  %v67_v28 = vmul.f32 0.5, %v331_v11 }
  0x97   :  { %v89_v35 = vmul.f32 %v88_v30, %v71_v10  ;;  %v115_v39 = vadd.f32 0.0036580483, %v114_v32  ;;  %v78_v46 = vmul.f32 %v77_v40, %v71_v10 }
  0x98   :  { %v126_v37 = vadd.f32 0.014752088, %v125_v33 }
  0x99   :  { %v90_v38 = vadd.f32 0.4994258, %v89_v35  ;;  %v116_v45 = vmul.f32 %v115_v39, %v111_v20  ;;  %v79_v51 = vadd.f32 0.18741608, %v78_v46 }
  0x9a   :  { %v127_v41 = vmul.f32 %v126_v37, %v111_v20 }
  0x9b   :  { %v91_v42 = vmul.f32 %v90_v38, %v71_v10  ;;  %v117_v49 = vadd.f32 0.05243302, %v116_v45  ;;  %v80_v56 = vmul.f32 %v79_v51, %v71_v10 }
  0x9c   :  { %v128_v43 = vadd.f32 0.112945676, %v127_v41 }
  0x9d   :  { %v92_v44 = vadd.f32 1.0, %v91_v42  ;;  %v118_v55 = vmul.f32 %v117_v49, %v111_v20  ;;  %v81_v61 = vadd.f32 1.1283791, %v80_v56 }
  0x9e   :  { %v129_v47 = vmul.f32 %v128_v43, %v111_v20 }
  0x9f   :  { %243 = vrcp.f32 %v92_v44  ;;  %v104_v59 = vand.u32 2147483648, %v92_v44  ;;  %v119_v60 = vadd.f32 0.18741608, %v118_v55  ;;  %v102_v63 = vand.u32 2147483647, %v92_v44 }
  0xa0   :  { %v130_v48 = vadd.f32 0.4994258, %v129_v47  ;;  %vm98_vm2 = vweird.f32 %v92_v44  ;;  %v82_v5 = vmul.f32 %v81_v61, %v327_v7 }
  0xa1   :  { %v105_v2 = vor.u32 1.1754944e-38, %v104_v59  ;;  %v120_v3 = vmul.f32 %v119_v60, %v111_v20  ;;  %vm103_vm4 = vcmp.eq.f32.partialorder %v102_v63, 8.507059e+37 }
  0xa2   :  { %v131_v52 = vmul.f32 %v130_v48, %v111_v20 }
  0xa3   :  { %v121_v15 = vadd.f32 1.1283791, %v120_v3 }
  0xa4   :  { %v132_v53 = vadd.f32 1.0, %v131_v52 }
  0xa5   :  { %v244_v54 = vpop.eup %243  ;;  %v122_v7 = vmul.f32 %v121_v15, %v334_v14  ;;  %v242_v14 = vld [vmem:[%s370_s4] ss:$0 sm:$0xff]  ;;  %s275_s4 = smov 128  }
  0xa6   :  { %v94_v57 = vmul.f32 %v244_v54, %v92_v44  ;;  %245 = vrcp.f32 %v132_v53  ;;  %vm99_vm1 = vweird.f32 %v244_v54  ;;  %v144_v13 = vand.u32 2147483648, %v132_v53 }
  0xa7   :  { %vm100_vm3 = vmor %vm98_vm2, %vm99_vm1  ;;  %v142_v17 = vand.u32 2147483647, %v132_v53  ;;  %vm138_vm6 = vweird.f32 %v132_v53 }
  0xa8   :  { %v95_v58 = vsub.f32 1.0, %v94_v57  ;;  %v145_v20 = vor.u32 1.1754944e-38, %v144_v13 }
  0xa9   :  { %vm143_vm8 = vcmp.eq.f32.partialorder %v142_v17, 8.507059e+37 }
  0xaa   :  { %v96_v62 = vmul.f32 %v244_v54, %v95_v58 }
  0xac   :  { %v246_v0 = vpop.eup %245  ;;  %v97_v1 = vadd.f32 %v244_v54, %v96_v62 }
  0xad   :  { %v134_v4 = vmul.f32 %v246_v0, %v132_v53  ;;  %vm139_vm5 = vweird.f32 %v246_v0 }
  0xae   :  { %v101_v8 = vsel %vm100_vm3, %v244_v54, %v97_v1  ;;  %vm140_vm7 = vmor %vm138_vm6, %vm139_vm5 }
  0xaf   :  { %v106_v9 = vsel %vm103_vm4, %v105_v2, %v101_v8  ;;  %v135_v10 = vsub.f32 1.0, %v134_v4 }
  0xb0   :  { %v107_v12 = vmul.f32 %v106_v9, %v82_v5 }
  0xb1   :  { %v136_v16 = vmul.f32 %v246_v0, %v135_v10 }
  0xb2   :  { %v227_v18 = vclamps-f32 %v107_v12, 1.0 }
  0xb3   :  { %v137_v19 = vadd.f32 %v246_v0, %v136_v16 }
  0xb4   :  { %v150_v22 = vadd.f32 1.0, %v227_v18 }
  0xb5   :  { %v141_v23 = vsel %vm140_vm7, %v246_v0, %v137_v19 }
  0xb6   :  { %v146_v24 = vsel %vm143_vm8, %v145_v20, %v141_v23  ;;  %v152_v25 = vmul.f32 %v150_v22, %v66_v21 }
  0xb7   :  { %v147_v26 = vmul.f32 %v146_v24, %v122_v7 }
  0xb8   :  { %229 = vmatmul.msk.f32.vlgmr.msra.gmra.mxu1 %vm160_vm9, %v152_v25 }
  0xb9   :  { %v228_v27 = vclamps-f32 %v147_v26, 1.0 }
  0xbb   :  { %v151_v29 = vadd.f32 1.0, %v228_v27 }
  0xbd   :  { %v153_v30 = vmul.f32 %v151_v29, %v67_v28 }
  0xbf   :  { %230 = vmatmul.msk.f32.vlgmr.msra.gmra.mxu2 %vm160_vm9, %v153_v30 }
 0x135   :  { %v184_v6 = vpop.f32.mrf.mxu1 }
 0x136   :  { %v190_v32 = vadd.f32 %v184_v6, %v154_v31 }
 0x138   :  { %192 = vst.msk [vmem:[#allocation2] sm:$0xff] %vm25_vm0, %v190_v32 }
 0x13f   :  { %v197_v33 = vld [vmem:[#allocation2] sm:$0xff] }
 0x140   :  { %v203_v35 = vadd.f32 %v242_v14, %v197_v33 }
 0x142   :  { %v187_v36 = vpop.f32.mrf.mxu2  ;;  %205 = vst.msk [vmem:[#allocation3] sm:$0xff] %vm25_vm0, %v203_v35 }
 0x143   :  { %v191_v37 = vadd.f32 %v187_v36, %v155_v34 }
 0x145   :  { %193 = vst.msk [vmem:[#allocation2 + $0x8] sm:$0xff] %vm25_vm0, %v191_v37 }
 0x14c   :  { %v198_v11 = vld [vmem:[#allocation2 + $0x8] sm:$0xff] }
 0x14d   :  { %v204_v38 = vadd.f32 %v242_v14, %v198_v11 }
 0x14f   :  { %206 = vst.msk [vmem:[#allocation3 + $0x8] sm:$0xff] %vm25_vm0, %v204_v38 }
 0x150   :  { %219 = dma.vmem_to_hbm [thread:$0]  %s212_s10, 256, %s214_s13, [#allocation4], %s275_s4, %s275_s4, %s276_s14  }
 0x151   :  { %271 = dma.done.wait [#allocation4], 256  }
 0x152   :  { %272 = vsyncadd [#allocation4], 4294967040 }
 0x153   :  { %224 = vsyncpa [#allocation4], 1 }

</bundles_post_ra>
